<compile_context>
chip_gen: v7x
topology: tpu7x:2x2x1
jax: 0.10.0
libtpu: 0.0.40
codegen_flags: <defaults>
</compile_context>

<pallas_src>
import functools

import jax
import jax.numpy as jnp
from jax.experimental import pallas as pl
from jax.experimental.pallas import tpu as pltpu


def _round_up(a: int, b: int) -> int:
    return (a + b - 1) // b * b


def _sublane_granule(dtype) -> int:
    # second-minor block-dim granule: 8 for 4-byte, 16 for 2-byte, 32 for 1-byte
    return {4: 8, 2: 16, 1: 32}.get(jnp.dtype(dtype).itemsize, 8)


def _fused_linear_kernel(mat_ref, w_ref, b_ref, o_ref):
    """One (tm, C_out) output tile: (tm, K) @ (K, C_out) + bias, f32 accumulate."""
    acc = jnp.dot(mat_ref[...], w_ref[...], preferred_element_type=jnp.float32)
    o_ref[...] = (acc + b_ref[...].astype(jnp.float32)).astype(o_ref.dtype)


def prepare_onering_params(weight, bias):
    """One-time parameter prep (outside jit): nn.Linear stores weight as
    (out_feats, 7*in_feats); the kernel consumes (7*in_feats, out_feats)."""
    w_t = jnp.asarray(weight).T              # (7*in_feats, out_feats)
    b_row = jnp.asarray(bias).reshape(1, -1)  # (1, out_feats)
    return w_t, b_row


@functools.partial(jax.jit, static_argnames=("tile_m",))
def onering_conv_forward(x, neigh_orders, w_t, b_row, *, tile_m=512):
    """Pallas equivalent of onering_conv_layer.forward.

    x            : (N, in_feats)
    neigh_orders : (7*N,) int indices into rows of x
    w_t          : (7*in_feats, out_feats)  -- from prepare_onering_params
    b_row        : (1, out_feats)
    returns      : (N, out_feats)
    """
    n, c_in = x.shape
    k_feats, c_out = w_t.shape
    assert k_feats == 7 * c_in, (k_feats, c_in)

    # ---- 1-ring neighbor gather -> (N, 7*in_feats) --------------------------
    # TODO(synk): the arbitrary per-row gather stays in XLA (jnp.take); an
    # in-kernel equivalent needs per-row DMAs / a VMEM-resident dynamic gather,
    # which is slower than XLA's gather for small in_feats rows. No padding is
    # applied to `mat`, so it is written once and streamed once by the kernel.
    mat = jnp.take(x, neigh_orders.astype(jnp.int32), axis=0).reshape(n, k_feats)

    # ---- tile selection ------------------------------------------------------
    sub = _sublane_granule(x.dtype)
    x_bytes = jnp.dtype(x.dtype).itemsize
    w_bytes = jnp.dtype(w_t.dtype).itemsize
    o_bytes = x_bytes

    # VMEM footprint: resident weight/bias (counted double-buffered to be safe)
    # plus double-buffered streamed activation + output tiles.
    resident = 2 * k_feats * c_out * w_bytes + 2 * c_out * w_bytes
    per_row = 2 * k_feats * x_bytes + 2 * c_out * o_bytes
    budget = 24 * 1024 * 1024                     # headroom for v7x (64 MiB VMEM)

    tile_m = max(_round_up(int(tile_m), sub), sub)
    tm_cap = max(((budget - resident) // per_row) // sub * sub, sub)
    tm = min(tile_m, tm_cap, _round_up(n, sub))
    if n > sub:
        # Guarantee >= 2 M tiles so the parallel axis can be split across
        # TensorCores on v7x megacore.
        tm = min(tm, _round_up(pl.cdiv(n, 2), sub))

    grid = (pl.cdiv(n, tm),)

    vmem_need = resident + tm * per_row + 2 * 1024 * 1024
    vmem_limit = int(min(max(32 * 1024 * 1024, vmem_need), 64 * 1024 * 1024))

    cost = pl.CostEstimate(
        flops=2 * n * k_feats * c_out,
        transcendentals=0,
        bytes_accessed=(n * k_feats * x_bytes            # gathered activations
                        + k_feats * c_out * w_bytes      # weight (fetched once)
                        + c_out * w_bytes                # bias
                        + n * c_out * o_bytes),          # output
    )

    out = pl.pallas_call(
        _fused_linear_kernel,
        out_shape=jax.ShapeDtypeStruct((n, c_out), x.dtype),
        grid=grid,
        in_specs=[
            # streamed gathered activations: ragged M, full (un-tiled) K
            pl.BlockSpec((tm, k_feats), lambda i: (i, 0)),
            # weight: fully VMEM-resident, constant block index -> one fetch
            pl.BlockSpec((k_feats, c_out), lambda i: (0, 0)),
            # bias row: fetched once
            pl.BlockSpec((1, c_out), lambda i: (0, 0)),
        ],
        out_specs=pl.BlockSpec((tm, c_out), lambda i: (i, 0)),
        compiler_params=pltpu.CompilerParams(
            dimension_semantics=("parallel",),
            vmem_limit_bytes=vmem_limit,
        ),
        cost_estimate=cost,
    )(mat, w_t, b_row)

    return out


if __name__ == "__main__":
    key = jax.random.PRNGKey(0)
    k1, k2, k3, k4 = jax.random.split(key, 4)

    # Small, module-consistent shapes: level-2 icosphere has 162 vertices.
    N, in_feats, out_feats = 162, 32, 64
    K = 7 * in_feats

    x = jax.random.normal(k1, (N, in_feats), dtype=jnp.float32)

    # Deterministic fake 1-ring ordering: self + 6 neighbors per vertex,
    # flattened to the (7*N,) layout the PyTorch module indexes with.
    neigh = jax.random.randint(k2, (N, 6), 0, N, dtype=jnp.int32)
    self_idx = jnp.arange(N, dtype=jnp.int32)[:, None]
    neigh_orders = jnp.concatenate([self_idx, neigh], axis=1).reshape(-1)  # (7N,)

    # nn.Linear(7*in_feats, out_feats)-like parameters.
    weight = jax.random.normal(k3, (out_feats, K), dtype=jnp.float32) / jnp.sqrt(K)
    bias = jax.random.normal(k4, (out_feats,), dtype=jnp.float32) * 0.1

    w_t, b_row = prepare_onering_params(weight, bias)   # once, outside jit
    out = onering_conv_forward(x, neigh_orders, w_t, b_row)
    out = jax.block_until_ready(out)
    assert out.shape == (N, out_feats), out.shape

    # Reference (pure JAX, high precision).
    mat_ref = x[neigh_orders].reshape(N, K)
    ref = (
        jax.lax.dot_general(
            mat_ref, weight.T, (((1,), (0,)), ((), ())),
            precision=jax.lax.Precision.HIGHEST,
            preferred_element_type=jnp.float32,
        )
        + bias[None, :]
    )
    assert jnp.allclose(out, ref, rtol=1e-3, atol=1e-3), float(jnp.max(jnp.abs(out - ref)))

    print("KERNEL_OK")
</pallas_src>

<mosaic_0001>
module attributes {stable_mosaic.version = 11 : i64} {
  func.func @_fused_linear_kernel(%arg0: i32, %arg1: memref<88x224xf32, #tpu.memory_space<vmem>>, %arg2: memref<224x64xf32, #tpu.memory_space<vmem>>, %arg3: memref<1x64xf32, #tpu.memory_space<vmem>>, %arg4: memref<88x64xf32, #tpu.memory_space<vmem>>) attributes {dimension_semantics = [#tpu.dimension_semantics<parallel>], iteration_bounds = array<i64: 2>, scalar_prefetch = 0 : i64, scratch_operands = 0 : i64, tpu.core_type = #tpu.core_type<tc>, window_params = [{transform_indices = @transform_0, window_bounds = array<i64: 88, 224>}, {pipeline_mode = #tpu.pipeline_mode<synchronous>, transform_indices = @transform_1, window_bounds = array<i64: 224, 64>}, {pipeline_mode = #tpu.pipeline_mode<synchronous>, transform_indices = @transform_2, window_bounds = array<i64: 1, 64>}, {transform_indices = @transform_3, window_bounds = array<i64: 88, 64>}]} {
    %c0 = arith.constant 0 : index
    %c0_0 = arith.constant 0 : index
    %0 = vector.load %arg1[%c0, %c0_0] : memref<88x224xf32, #tpu.memory_space<vmem>>, vector<88x224xf32>
    %c0_1 = arith.constant 0 : index
    %c0_2 = arith.constant 0 : index
    %1 = vector.load %arg2[%c0_1, %c0_2] : memref<224x64xf32, #tpu.memory_space<vmem>>, vector<224x64xf32>
    %cst = arith.constant dense<0.000000e+00> : vector<88x64xf32>
    %2 = tpu.matmul %0, %1, %cst {dimension_numbers = #tpu.dot_dimension_numbers<[1], [0], [0], [1], [0, 0, 1, 1], [], []>} : vector<88x224xf32>, vector<224x64xf32>, vector<88x64xf32> -> vector<88x64xf32>
    %c0_3 = arith.constant 0 : index
    %c0_4 = arith.constant 0 : index
    %3 = vector.load %arg3[%c0_3, %c0_4] : memref<1x64xf32, #tpu.memory_space<vmem>>, vector<1x64xf32>
    %4 = vector.broadcast %3 : vector<1x64xf32> to vector<88x64xf32>
    %5 = arith.addf %2, %4 : vector<88x64xf32>
    %c0_5 = arith.constant 0 : index
    %c0_6 = arith.constant 0 : index
    %6 = vector.load %arg4[%c0_5, %c0_6] : memref<88x64xf32, #tpu.memory_space<vmem>>, vector<88x64xf32>
    tpu.vector_store %arg4[%c0_5, %c0_6], %5 {strides = array<i32>} : memref<88x64xf32, #tpu.memory_space<vmem>>, vector<88x64xf32>,
    return
  }
  func.func @transform_0(%arg0: i32) -> (i32, i32) {
    %c0_i32 = arith.constant 0 : i32
    %c0_i32_0 = arith.constant 0 : i32
    return %arg0, %c0_i32 : i32, i32
  }
  func.func @transform_1(%arg0: i32) -> (i32, i32) {
    %c0_i32 = arith.constant 0 : i32
    %c0_i32_0 = arith.constant 0 : i32
    %c0_i32_1 = arith.constant 0 : i32
    return %c0_i32, %c0_i32_0 : i32, i32
  }
  func.func @transform_2(%arg0: i32) -> (i32, i32) {
    %c0_i32 = arith.constant 0 : i32
    %c0_i32_0 = arith.constant 0 : i32
    %c0_i32_1 = arith.constant 0 : i32
    return %c0_i32, %c0_i32_0 : i32, i32
  }
  func.func @transform_3(%arg0: i32) -> (i32, i32) {
    %c0_i32 = arith.constant 0 : i32
    %c0_i32_0 = arith.constant 0 : i32
    return %arg0, %c0_i32 : i32, i32
  }
}

</mosaic_0001>

<bundles_post_ra>
// kernel: onering_conv_forward.1
= control target key start
LH: loop header
LB: loop body
LE: loop exit
PB: predicated region body
PF: predicated region fallthrough
CT: control target
= control target key end

     0   :  { %s986_s12 = smov 0   ;;  %s988_s13 = smov 0   ;;  %s1257_s0 = inlined_call_operand.vmem [shape: f32[162,224], index: 0, kind: input, shape index: {}]   ;;  %s1258_s1 = inlined_call_operand.vmem [shape: f32[224,64], index: 1, kind: input, shape index: {}]   ;;  %s1259_s2 = inlined_call_operand.vmem [shape: f32[1,64], index: 2, kind: input, shape index: {}]   ;;  %s1260_s3 = inlined_call_operand.vmem [shape: f32[162,64], index: 3, kind: output, shape index: {}]  }
   0x1   :  { %s990_s14 = smov 0  }
   0x2 LB: > { %s999_s15 = sadd.s32 4294967295, %s931_s14   ;;  %s1001_s16 = sadd.s32 1, %s931_s14   ;;  %s931_s14 = sphi %s990_s14, %s1267_s14   ;;  %s927_s13 = sphi %s988_s13, %s1266_s13   ;;  %s923_s12 = sphi %s986_s12, %s1265_s12  }
   0x3   : > { %s85_s17 = ssub.s32 %s931_s14, %s1001_s16  ;;  %s88_s18 = sadd.s32 1, %s927_s13 }
   0x4   : > { %p86_p0 = scmp.eq.s32.totalorder %s85_s17, 0  ;;  %p98_p1 = scmp.ne.s32.totalorder %s927_s13, %s923_s12 }
   0x5   : > { %p99_p2 = scmp.eq.s32.totalorder %s999_s15, 1  ;;  %p683_p3 = scmp.ge.s32.totalorder %s931_s14, 1 }
   0x6   : > { %s1009_s19 = scalar_select %p86_p0, %s927_s13, %s88_s18  }
   0x7   : > { %p1011_p4 = por %p99_p2, %p98_p1  ;;  %p149_p5 = scmp.lt.s32.totalorder %s931_s14, 3 }
   0x9   : > { %p150_p6 = pnand %p683_p3, %p149_p5 }
   0xa   : > { %v222_v0 = vld [vmem:[%s1258_s1] sm:$0xff] (!%p150_p6)  ;;  %v223_v1 = vld [vmem:[%s1258_s1 + $0x8] sm:$0xff] (!%p150_p6)  ;;  %v224_v2 = vld [vmem:[%s1258_s1 + $0x10] sm:$0xff] (!%p150_p6)  ;;  %s1025_s27 = smul.u32 (!%p150_p6), 11, %s999_s15  ;;  %v965_v3 = vmov (!%p150_p6), 0.0|0.0   ;;  %vm257_vm0 = vcmask (!%p150_p6), 785408  }
   0xb   : > { %153 = sbr.rel (%p150_p6) target bundleno = 364 (0x16c), region = 32  ;;  %712 = vmatprep.subr.bf16.mxu0 (!%p150_p6), %v965_v3  ;;  %v713_v4 = vpack.c.bf16 (!%p150_p6), %v223_v1, %v222_v0  ;;  %754 = vmatprep.subr.bf16.mxu1 (!%p150_p6), %v965_v3  ;;  %v225_v5 = vld [vmem:[%s1258_s1 + $0x18] sm:$0xff] (!%p150_p6)  ;;  %v226_v7 = vld [vmem:[%s1258_s1 + $0x20] sm:$0xff] (!%p150_p6)  ;;  %v227_v8 = vld [vmem:[%s1258_s1 + $0x28] sm:$0xff] (!%p150_p6)  ;;  %s175_s24 = sand.u32 (!%p150_p6), 1, %s923_s12   ;;  %vm411_vm1 = vcmask (!%p150_p6), 523264  }
   0xc   : > { %p184_p7 = scmp.lt.s32.totalorder (!%p150_p6), %s1025_s27, 20  ;;  %v716_v6 = vpack.c.bf16 (!%p150_p6), %v225_v5, %v224_v2  ;;  %v719_v9 = vpack.c.bf16 (!%p150_p6), %v227_v8, %v226_v7  ;;  %v228_v10 = vld [vmem:[%s1258_s1 + $0x30] sm:$0xff] (!%p150_p6)  ;;  %v229_v11 = vld [vmem:[%s1258_s1 + $0x38] sm:$0xff] (!%p150_p6)  ;;  %v230_v15 = vld [vmem:[%s1258_s1 + $0x40] sm:$0xff] (!%p150_p6)  ;;  %s782_s25 = smul.u32 (!%p150_p6), 88, %s175_s24 }
   0xd   : > { %714 = vmatpush1.bf16.msra.mxu0 (!%p150_p6), %v713_v4  ;;  %768 = vmatpush1.bf16.msra.mxu1 (!%p150_p6), %v713_v4  ;;  %v722_v14 = vpack.c.bf16 (!%p150_p6), %v229_v11, %v228_v10  ;;  %v231_v16 = vld [vmem:[%s1258_s1 + $0x48] sm:$0xff] (!%p150_p6)  ;;  %v232_v18 = vld [vmem:[%s1258_s1 + $0x50] sm:$0xff] (!%p150_p6)  ;;  %v233_v19 = vld [vmem:[%s1258_s1 + $0x58] sm:$0xff] (!%p150_p6) }
   0xe   : > { %715 = vmatprep.subr.bf16.mxu0 (!%p150_p6), %v965_v3  ;;  %755 = vmatprep.subr.bf16.mxu1 (!%p150_p6), %v965_v3  ;;  %v725_v17 = vpack.c.bf16 (!%p150_p6), %v231_v16, %v230_v15  ;;  %v728_v20 = vpack.c.bf16 (!%p150_p6), %v233_v19, %v232_v18  ;;  %v234_v21 = vld [vmem:[%s1258_s1 + $0x60] sm:$0xff] (!%p150_p6)  ;;  %v235_v22 = vld [vmem:[%s1258_s1 + $0x68] sm:$0xff] (!%p150_p6)  ;;  %v236_v24 = vld [vmem:[%s1258_s1 + $0x70] sm:$0xff] (!%p150_p6)  ;;  %s1174_s29 = scalar_lea.vmem (!%p150_p6), [#allocation2], %s782_s25  }
   0xf   : > { %v731_v23 = vpack.c.bf16 (!%p150_p6), %v235_v22, %v234_v21  ;;  %v237_v25 = vld [vmem:[%s1258_s1 + $0x78] sm:$0xff] (!%p150_p6)  ;;  %v238_v27 = vld [vmem:[%s1258_s1 + $0x80] sm:$0xff] (!%p150_p6)  ;;  %v239_v28 = vld [vmem:[%s1258_s1 + $0x88] sm:$0xff] (!%p150_p6) }
  0x10   : > { %v734_v26 = vpack.c.bf16 (!%p150_p6), %v237_v25, %v236_v24  ;;  %v737_v29 = vpack.c.bf16 (!%p150_p6), %v239_v28, %v238_v27  ;;  %v240_v30 = vld [vmem:[%s1258_s1 + $0x90] sm:$0xff] (!%p150_p6)  ;;  %v241_v31 = vld [vmem:[%s1258_s1 + $0x98] sm:$0xff] (!%p150_p6)  ;;  %v242_v33 = vld [vmem:[%s1258_s1 + $0xa0] sm:$0xff] (!%p150_p6) }
  0x11   : > { %717 = vmatpush1.bf16.msra.mxu0 (!%p150_p6), %v716_v6  ;;  %769 = vmatpush1.bf16.msra.mxu1 (!%p150_p6), %v716_v6  ;;  %v740_v32 = vpack.c.bf16 (!%p150_p6), %v241_v31, %v240_v30  ;;  %v243_v34 = vld [vmem:[%s1258_s1 + $0xa8] sm:$0xff] (!%p150_p6)  ;;  %v244_v36 = vld [vmem:[%s1258_s1 + $0xb0] sm:$0xff] (!%p150_p6)  ;;  %v245_v37 = vld [vmem:[%s1258_s1 + $0xb8] sm:$0xff] (!%p150_p6) }
  0x12   : > { %s185_s7 = scalar_select %p184_p7, %s1025_s27, 20  ;;  %718 = vmatprep.subr.bf16.mxu0 %v965_v3  ;;  %756 = vmatprep.subr.bf16.mxu1 %v965_v3  ;;  %v743_v35 = vpack.c.bf16 %v243_v34, %v242_v33  ;;  %v746_v38 = vpack.c.bf16 %v245_v37, %v244_v36  ;;  %v246_v39 = vld [vmem:[%s1258_s1 + $0xc0] sm:$0xff]  ;;  %v247_v40 = vld [vmem:[%s1258_s1 + $0xc8] sm:$0xff]  ;;  %v248_v42 = vld [vmem:[%s1258_s1 + $0xd0] sm:$0xff] }
  0x13   : > { %v749_v41 = vpack.c.bf16 %v247_v40, %v246_v39  ;;  %v249_v43 = vld [vmem:[%s1258_s1 + $0xd8] sm:$0xff]  ;;  %v686_v1 = vld [vmem:[%s1259_s2] ss:$0 sm:$0xff]  ;;  %s431_s12 = ssub.s32 (%p1011_p4), 21, %s1025_s27 }
  0x14   : > { %s710_s8 = sshll.u32 %s185_s7, 4  ;;  %v752_v44 = vpack.c.bf16 %v249_v43, %v248_v42  ;;  %p432_p8 = scmp.lt.s32.totalorder (%p1011_p4), %s431_s12, 11 }
  0x15   : > { %s1045_s11 = scalar_lea.vmem %s1257_s0, %s710_s8  ;;  %720 = vmatpush1.bf16.msra.mxu0 %v719_v9  ;;  %770 = vmatpush1.bf16.msra.mxu1 %v719_v9 }
  0x16   : > { %v201_v12 = vld [vmem:[%s1045_s11 + $0x8] sm:$0xff]  ;;  %721 = vmatprep.subr.bf16.mxu0 %v965_v3  ;;  %757 = vmatprep.subr.bf16.mxu1 %v965_v3  ;;  %v200_v45 = vld [vmem:[%s1045_s11] sm:$0xff]  ;;  %v203_v47 = vld [vmem:[%s1045_s11 + $0x18] sm:$0xff] }
  0x17   : > { %687 = vmatprep.mubr.msk.f32.mxu0 %vm257_vm0, %v201_v12  ;;  %v213_v13 = vld [vmem:[%s1045_s11 + $0x68] sm:$0xff]  ;;  %v212_v46 = vld [vmem:[%s1045_s11 + $0x60] sm:$0xff]  ;;  %v215_v48 = vld [vmem:[%s1045_s11 + $0x78] sm:$0xff] }
  0x18   : > { %693 = vmatprep.mubr.msk.f32.mxu1 %vm257_vm0, %v213_v13  ;;  %v202_v49 = vld [vmem:[%s1045_s11 + $0x10] sm:$0xff]  ;;  %v205_v51 = vld [vmem:[%s1045_s11 + $0x28] sm:$0xff]  ;;  %v204_v53 = vld [vmem:[%s1045_s11 + $0x20] sm:$0xff] }
  0x19   : > { %723 = vmatpush1.bf16.msra.mxu0 %v722_v14  ;;  %771 = vmatpush1.bf16.msra.mxu1 %v722_v14  ;;  %v214_v50 = vld [vmem:[%s1045_s11 + $0x70] sm:$0xff]  ;;  %v217_v52 = vld [vmem:[%s1045_s11 + $0x88] sm:$0xff]  ;;  %v216_v54 = vld [vmem:[%s1045_s11 + $0x80] sm:$0xff] }
  0x1a   : > { %724 = vmatprep.subr.bf16.mxu0 %v965_v3  ;;  %758 = vmatprep.subr.bf16.mxu1 %v965_v3  ;;  %v207_v55 = vld [vmem:[%s1045_s11 + $0x38] sm:$0xff]  ;;  %v206_v57 = vld [vmem:[%s1045_s11 + $0x30] sm:$0xff]  ;;  %v209_v59 = vld [vmem:[%s1045_s11 + $0x48] sm:$0xff] }
  0x1b   : > { %v219_v56 = vld [vmem:[%s1045_s11 + $0x98] sm:$0xff]  ;;  %v218_v58 = vld [vmem:[%s1045_s11 + $0x90] sm:$0xff]  ;;  %v221_v60 = vld [vmem:[%s1045_s11 + $0xa8] sm:$0xff] }
  0x1c   : > { %v208_v61 = vld [vmem:[%s1045_s11 + $0x40] sm:$0xff]  ;;  %v211_v63 = vld [vmem:[%s1045_s11 + $0x58] sm:$0xff]  ;;  %v210_v0 = vld [vmem:[%s1045_s11 + $0x50] sm:$0xff] }
  0x1d   : > { %726 = vmatpush1.bf16.msra.mxu0 %v725_v17  ;;  %772 = vmatpush1.bf16.msra.mxu1 %v725_v17  ;;  %v220_v62 = vld [vmem:[%s1045_s11 + $0xa0] sm:$0xff]  ;;  %s711_s11 = smul.u32 (%p1011_p4), 88, %s999_s15 }
  0x1e   : > { %727 = vmatprep.subr.bf16.mxu0 %v965_v3  ;;  %759 = vmatprep.subr.bf16.mxu1 %v965_v3 }
  0x1f   : > { %s1205_s5 = scalar_lea.vmem (%p1011_p4), %s1260_s3, %s711_s11  }
  0x21   : > { %729 = vmatpush1.bf16.msra.mxu0 %v728_v20  ;;  %773 = vmatpush1.bf16.msra.mxu1 %v728_v20 }
  0x22   : > { %730 = vmatprep.subr.bf16.mxu0 %v965_v3  ;;  %760 = vmatprep.subr.bf16.mxu1 %v965_v3 }
  0x25   : > { %732 = vmatpush1.bf16.msra.mxu0 %v731_v23  ;;  %774 = vmatpush1.bf16.msra.mxu1 %v731_v23 }
  0x26   : > { %733 = vmatprep.subr.bf16.mxu0 %v965_v3  ;;  %761 = vmatprep.subr.bf16.mxu1 %v965_v3 }
  0x29   : > { %735 = vmatpush1.bf16.msra.mxu0 %v734_v26  ;;  %775 = vmatpush1.bf16.msra.mxu1 %v734_v26 }
  0x2a   : > { %736 = vmatprep.subr.bf16.mxu0 %v965_v3  ;;  %762 = vmatprep.subr.bf16.mxu1 %v965_v3 }
  0x2d   : > { %738 = vmatpush1.bf16.msra.mxu0 %v737_v29  ;;  %776 = vmatpush1.bf16.msra.mxu1 %v737_v29 }
  0x2e   : > { %739 = vmatprep.subr.bf16.mxu0 %v965_v3  ;;  %763 = vmatprep.subr.bf16.mxu1 %v965_v3 }
  0x31   : > { %741 = vmatpush1.bf16.msra.mxu0 %v740_v32  ;;  %777 = vmatpush1.bf16.msra.mxu1 %v740_v32 }
  0x32   : > { %742 = vmatprep.subr.bf16.mxu0 %v965_v3  ;;  %764 = vmatprep.subr.bf16.mxu1 %v965_v3 }
  0x35   : > { %744 = vmatpush1.bf16.msra.mxu0 %v743_v35  ;;  %778 = vmatpush1.bf16.msra.mxu1 %v743_v35 }
  0x36   : > { %745 = vmatprep.subr.bf16.mxu0 %v965_v3  ;;  %765 = vmatprep.subr.bf16.mxu1 %v965_v3 }
  0x39   : > { %747 = vmatpush1.bf16.msra.mxu0 %v746_v38  ;;  %779 = vmatpush1.bf16.msra.mxu1 %v746_v38 }
  0x3a   : > { %748 = vmatprep.subr.bf16.mxu0 %v965_v3  ;;  %766 = vmatprep.subr.bf16.mxu1 %v965_v3 }
  0x3d   : > { %750 = vmatpush1.bf16.msra.mxu0 %v749_v41  ;;  %780 = vmatpush1.bf16.msra.mxu1 %v749_v41 }
  0x3e   : > { %751 = vmatprep.subr.bf16.mxu0 %v965_v3  ;;  %767 = vmatprep.subr.bf16.mxu1 %v965_v3 }
  0x41   : > { %753 = vmatpush1.bf16.msra.mxu0 %v752_v44  ;;  %781 = vmatpush1.bf16.msra.mxu1 %v752_v44 }
  0x44   : > { %356 = vmatmul.mubr.f32.vlgmr.msra.gmra.mrb[0].mxu0 %v200_v45  ;;  %386 = vmatmul.mubr.f32.vlgmr.msra.gmra.mrb[0].mxu1 %v212_v46 }
  0x45   : > { %688 = vmatprep.mubr.msk.f32.mxu0 %vm257_vm0, %v203_v47  ;;  %694 = vmatprep.mubr.msk.f32.mxu1 %vm257_vm0, %v215_v48 }
  0x48   : > { %361 = vmatmul.mubr.f32.gmra.mrb[2].mxu0 %v202_v49  ;;  %391 = vmatmul.mubr.f32.gmra.mrb[2].mxu1 %v214_v50 }
  0x49   : > { %689 = vmatprep.mubr.msk.f32.mxu0 %vm257_vm0, %v205_v51  ;;  %695 = vmatprep.mubr.msk.f32.mxu1 %vm257_vm0, %v217_v52 }
  0x4c   : > { %366 = vmatmul.mubr.f32.gmra.mrb[4].mxu0 %v204_v53  ;;  %396 = vmatmul.mubr.f32.gmra.mrb[4].mxu1 %v216_v54 }
  0x4d   : > { %690 = vmatprep.mubr.msk.f32.mxu0 %vm257_vm0, %v207_v55  ;;  %696 = vmatprep.mubr.msk.f32.mxu1 %vm257_vm0, %v219_v56 }
  0x50   : > { %371 = vmatmul.mubr.f32.gmra.mrb[6].mxu0 %v206_v57  ;;  %401 = vmatmul.mubr.f32.gmra.mrb[6].mxu1 %v218_v58 }
  0x51   : > { %691 = vmatprep.mubr.msk.f32.mxu0 %vm257_vm0, %v209_v59  ;;  %697 = vmatprep.mubr.msk.f32.mxu1 %vm257_vm0, %v221_v60 }
  0x54   : > { %376 = vmatmul.mubr.f32.gmra.mrb[8].mxu0 %v208_v61  ;;  %406 = vmatmul.mubr.f32.gmra.mrb[8].mxu1 %v220_v62 }
  0x55   : > { %692 = vmatprep.mubr.msk.f32.mxu0 %vm257_vm0, %v211_v63 }
  0x58   : > { %381 = vmatmul.mubr.f32.gmra.mrb[10].mxu0 %v210_v0 }
 0x117   : > { %v357_v2 = vpop.f32.mrb[0].mxu0  ;;  %v387_v3 = vpop.f32.mrb[0].mxu1 }
 0x118   : > { %v358_v4 = vadd.f32 %v686_v1, %v357_v2  ;;  %v359_v5 = vpop.f32.mrb[1].mxu0  ;;  %v388_v6 = vadd.f32 %v686_v1, %v387_v3  ;;  %v389_v7 = vpop.f32.mrb[1].mxu1 }
 0x11a   : > { %412 = vst.msk [vmem:[%s1174_s29] sm:$0xff] %vm411_vm1, %v358_v4  ;;  %418 = vst.msk [vmem:[%s1174_s29 + $0x30] sm:$0xff] %vm411_vm1, %v388_v6 }
 0x11b   : > { %v362_v8 = vpop.f32.mrb[2].mxu0  ;;  %v392_v9 = vpop.f32.mrb[2].mxu1 }
 0x11c   : > { %v363_v10 = vadd.f32 %v686_v1, %v362_v8  ;;  %v364_v11 = vpop.f32.mrb[3].mxu0  ;;  %v393_v12 = vadd.f32 %v686_v1, %v392_v9  ;;  %v394_v13 = vpop.f32.mrb[3].mxu1 }
 0x11e   : > { %413 = vst.msk [vmem:[%s1174_s29 + $0x8] sm:$0xff] %vm411_vm1, %v363_v10  ;;  %419 = vst.msk [vmem:[%s1174_s29 + $0x38] sm:$0xff] %vm411_vm1, %v393_v12 }
 0x11f   : > { %v367_v14 = vpop.f32.mrb[4].mxu0  ;;  %v397_v15 = vpop.f32.mrb[4].mxu1 }
 0x120   : > { %v368_v16 = vadd.f32 %v686_v1, %v367_v14  ;;  %v369_v17 = vpop.f32.mrb[5].mxu0  ;;  %v398_v18 = vadd.f32 %v686_v1, %v397_v15  ;;  %v399_v19 = vpop.f32.mrb[5].mxu1 }
 0x122   : > { %414 = vst.msk [vmem:[%s1174_s29 + $0x10] sm:$0xff] %vm411_vm1, %v368_v16  ;;  %420 = vst.msk [vmem:[%s1174_s29 + $0x40] sm:$0xff] %vm411_vm1, %v398_v18 }
 0x123   : > { %v372_v20 = vpop.f32.mrb[6].mxu0  ;;  %v402_v21 = vpop.f32.mrb[6].mxu1 }
 0x124   : > { %v373_v22 = vadd.f32 %v686_v1, %v372_v20  ;;  %v374_v23 = vpop.f32.mrb[7].mxu0  ;;  %v403_v24 = vadd.f32 %v686_v1, %v402_v21  ;;  %v404_v25 = vpop.f32.mrb[7].mxu1 }
 0x126   : > { %415 = vst.msk [vmem:[%s1174_s29 + $0x18] sm:$0xff] %vm411_vm1, %v373_v22  ;;  %421 = vst.msk [vmem:[%s1174_s29 + $0x48] sm:$0xff] %vm411_vm1, %v403_v24 }
 0x127   : > { %v377_v26 = vpop.f32.mrb[8].mxu0  ;;  %v407_v27 = vpop.f32.mrb[8].mxu1 }
 0x128   : > { %v378_v28 = vadd.f32 %v686_v1, %v377_v26  ;;  %v379_v29 = vpop.f32.mrb[9].mxu0  ;;  %v408_v30 = vadd.f32 %v686_v1, %v407_v27  ;;  %v409_v31 = vpop.f32.mrb[9].mxu1  ;;  %429 = sbr.rel (!%p1011_p4) target bundleno = 364 (0x16c), region = 36 }
 0x12a   : > { %416 = vst.msk [vmem:[%s1174_s29 + $0x20] sm:$0xff] %vm411_vm1, %v378_v28  ;;  %422 = vst.msk [vmem:[%s1174_s29 + $0x50] sm:$0xff] %vm411_vm1, %v408_v30 }
 0x12b   : > { %v382_v32 = vpop.f32.mrb[10].mxu0 }
 0x12c   : > { %v383_v33 = vadd.f32 %v686_v1, %v382_v32  ;;  %v384_v34 = vpop.f32.mrb[11].mxu0 }
 0x12e   : > { %417 = vst.msk [vmem:[%s1174_s29 + $0x28] sm:$0xff] %vm411_vm1, %v383_v33 }
 0x12f   : > { %s1269_s12 = smov (!%p432_p8, %s431_s12), 11 }
 0x130   : > { %s698_s6 = sshll.u32 %s1269_s12, 7 }
 0x131   : > { %p701_p9 = scmp.eq.s32.totalorder %s698_s6, 0 }
 0x132   : > { %873 = sdivrem.u32 (!%p701_p9), %s1269_s12, 11 }
 0x133   : > { %440 = sbr.rel (%p701_p9) target bundleno = 364 (0x16c), region = 40 }
 0x13b   : > { %s1211_s20 = spop.drf %873 }
 0x13c   : > { %p702_p10 = scmp.le.s32.totalorder %s1211_s20, 0 }
 0x13d   : > { %s1262_s15 = smov (!%p702_p10), %s1205_s5  ;;  %s1263_s27 = smov (!%p702_p10), %s1174_s29 }
 0x13e   : > { %636 = sbr.rel (%p702_p10) target bundleno = 335 (0x14f), region = 116  ;;  %s1220_s7 = smov (!%p702_p10), 0  }
 0x13f   : > { %s1222_s8 = smov (!%p702_p10), 0  }
 0x145 LB: >> { %v524_v35 = vld [vmem:[%s939_s27] sm:$0xff]  ;;  %v526_v36 = vld [vmem:[%s939_s27 + $0x8] sm:$0xff]  ;;  %v528_v37 = vld [vmem:[%s939_s27 + $0x10] sm:$0xff]  ;;  %s546_s9 = sadd.s32 1, %s943_s7  ;;  %s518_s8 = sadd.s32 1, %s947_s8   ;;  %s947_s8 = sphi %s1222_s8, %s518_s8   ;;  %s943_s7 = sphi %s1220_s7, %s1264_s7   ;;  %s939_s27 = sphi %s1263_s27, %s551_s27   ;;  %s935_s15 = sphi %s1262_s15, %s552_s15  }
 0x146   : >> { %525 = vst [vmem:[%s935_s15] sm:$0xff] %v524_v35  ;;  %527 = vst [vmem:[%s935_s15 + $0x8] sm:$0xff] %v526_v36  ;;  %v530_v38 = vld [vmem:[%s939_s27 + $0x18] sm:$0xff]  ;;  %v532_v39 = vld [vmem:[%s939_s27 + $0x20] sm:$0xff]  ;;  %p547_p11 = scmp.ge.s32.totalorder %s546_s9, %s1211_s20  ;;  %p517_p12 = scmp.ge.s32.totalorder %s518_s8, %s1211_s20 }
 0x147   : >> { %529 = vst [vmem:[%s935_s15 + $0x10] sm:$0xff] %v528_v37  ;;  %v534_v40 = vld [vmem:[%s939_s27 + $0x28] sm:$0xff]  ;;  %531 = vst [vmem:[%s935_s15 + $0x18] sm:$0xff] %v530_v38  ;;  %v536_v41 = vld [vmem:[%s939_s27 + $0x30] sm:$0xff] }
 0x148   : >> { %533 = vst [vmem:[%s935_s15 + $0x20] sm:$0xff] %v532_v39  ;;  %535 = vst [vmem:[%s935_s15 + $0x28] sm:$0xff] %v534_v40  ;;  %v538_v42 = vld [vmem:[%s939_s27 + $0x38] sm:$0xff]  ;;  %v540_v43 = vld [vmem:[%s939_s27 + $0x40] sm:$0xff]  ;;  %s1271_s9 = smov (%p547_p11, %s546_s9), 0  ;;  %520 = sbr.rel (!%p517_p12) target bundleno = 325 (0x145), region = 122 }
 0x149   : >> { %537 = vst [vmem:[%s935_s15 + $0x30] sm:$0xff] %v536_v41  ;;  %539 = vst [vmem:[%s935_s15 + $0x38] sm:$0xff] %v538_v42  ;;  %v542_v44 = vld [vmem:[%s939_s27 + $0x48] sm:$0xff]  ;;  %v544_v45 = vld [vmem:[%s939_s27 + $0x50] sm:$0xff]  ;;  %s549_s10 = smul.u32 88, %s1271_s9  ;;  %s1264_s7 = smov %s1271_s9 }
 0x14a   : >> { %541 = vst [vmem:[%s935_s15 + $0x40] sm:$0xff] %v540_v43  ;;  %543 = vst [vmem:[%s935_s15 + $0x48] sm:$0xff] %v542_v44 }
 0x14b   : >> { %545 = vst [vmem:[%s935_s15 + $0x50] sm:$0xff] %v544_v45  ;;  %s551_s27 = scalar_lea.vmem %s1174_s29, %s549_s10 [#allocation2]   ;;  %s552_s15 = scalar_lea.vmem %s1205_s5, %s549_s10  }
 0x14f PF: > { %875 = sdivrem.u32 %s1269_s12, 11 }
 0x150   : > { %s703_s14 = smul.u32 88, %s1211_s20 }
 0x152   : > { %s557_s17 = scalar_lea.vmem %s1174_s29, %s703_s14 [#allocation2]   ;;  %s559_s18 = scalar_lea.vmem %s1205_s5, %s703_s14  }
 0x158   : > { %s876_s21 = spop.drf %875 }
 0x159   : > { %p705_p13 = scmp.le.s32.totalorder %s876_s21, 0 }
 0x15a   : > { %s949_s22 = smov (!%p705_p13), %s559_s18   ;;  %s953_s23 = smov (!%p705_p13), %s557_s17  }
 0x15b   : > { %650 = sbr.rel (%p705_p13) target bundleno = 364 (0x16c), region = 127  ;;  %s957_s24 = smov (!%p705_p13), 0  }
 0x15c   : > { %s961_s25 = smov (!%p705_p13), 0  }
 0x162 LB: >> { %v569_v46 = vld [vmem:[%s955_s23] sm:$0xff]  ;;  %s571_s26 = sadd.s32 1, %s959_s24  ;;  %s563_s25 = sadd.s32 1, %s963_s25   ;;  %s963_s25 = sphi %s961_s25, %s563_s25   ;;  %s959_s24 = sphi %s957_s24, %s958_s24   ;;  %s955_s23 = sphi %s953_s23, %s576_s23   ;;  %s951_s22 = sphi %s949_s22, %s577_s22  }
 0x163   : >> { %570 = vst [vmem:[%s951_s22] sm:$0xff] %v569_v46  ;;  %p572_p0 = scmp.ge.s32.totalorder %s571_s26, %s876_s21  ;;  %p562_p1 = scmp.ge.s32.totalorder %s563_s25, %s876_s21 }
 0x165   : >> { %s1273_s26 = smov (%p572_p0, %s571_s26), 0  ;;  %565 = sbr.rel (!%p562_p1) target bundleno = 354 (0x162), region = 133 }
 0x166   : >> { %s706_s28 = sshll.u32 %s1273_s26, 3  ;;  %s958_s24 = smov %s1273_s26  }
 0x167   : >> { %s576_s23 = scalar_lea.vmem %s557_s17, %s706_s28 [#allocation2]   ;;  %s577_s22 = scalar_lea.vmem %s559_s18, %s706_s28  }
 0x16c PF: > { %p10_p2 = scmp.ge.s32.totalorder %s1001_s16, 4   ;;  %s1265_s12 = smov %s927_s13 }
 0x16d   : > { %s1266_s13 = smov %s1009_s19  ;;  %s1267_s14 = smov %s1001_s16 }
 0x16e   :  { %12 = sbr.rel (!%p10_p2) target bundleno = 2 (0x2), region = 144 }

</bundles_post_ra>
